<compile_context>
chip_gen: v6e
topology: v6e:2x2x1
jax: 0.10.0
libtpu: 0.0.40
codegen_flags: <defaults>
</compile_context>

<pallas_src>
import jax
import jax.numpy as jnp
from jax.experimental import pallas as pl
from jax.experimental.pallas import tpu as pltpu


def gcn_layer_kernel(a_ref, f_ref, w_ref, b_ref, o_ref):
    """One GCNConv layer: o = relu(A_block @ (F @ W) + b).

    a_ref : (tm, Np)  bf16 row slab of normalized adjacency
    f_ref : (Np, Fp)  bf16 full node features (resident across grid steps)
    w_ref : (Fp, Op)  bf16 weight
    b_ref : (1,  Op)  f32  bias
    o_ref : (tm, Op)  output row block (bf16 or f32)
    """
    # Feature transform first so the O(N^2) adjacency matmul runs over the
    # (usually narrower) output-feature width.
    fw = jnp.dot(f_ref[...], w_ref[...], preferred_element_type=jnp.float32)
    z = jnp.dot(a_ref[...], fw.astype(jnp.bfloat16),
                preferred_element_type=jnp.float32)
    z = z + b_ref[...]                       # f32 bias add
    o_ref[...] = jnp.maximum(z, 0.0).astype(o_ref.dtype)


def _round_up(x, m):
    return ((x + m - 1) // m) * m


def _gcn_layer(a_hat, feats, w, b, tm, out_dtype):
    """Row-tiled pallas_call for one GCN layer."""
    Np = a_hat.shape[0]
    Fp = feats.shape[1]
    Op = w.shape[1]
    grid_m = Np // tm

    cost = pl.CostEstimate(
        flops=2 * Np * Fp * Op * grid_m + 2 * Np * Np * Op,
        transcendentals=0,
        bytes_accessed=(Np * Np * a_hat.dtype.itemsize
                        + Np * Fp * feats.dtype.itemsize
                        + Fp * Op * w.dtype.itemsize
                        + Op * 4
                        + Np * Op * jnp.dtype(out_dtype).itemsize),
    )

    return pl.pallas_call(
        gcn_layer_kernel,
        out_shape=jax.ShapeDtypeStruct((Np, Op), out_dtype),
        grid_spec=pltpu.PrefetchScalarGridSpec(
            num_scalar_prefetch=0,
            grid=(grid_m,),
            in_specs=[
                pl.BlockSpec((tm, Np), lambda i: (i, 0)),   # A_hat row slab
                pl.BlockSpec((Np, Fp), lambda i: (0, 0)),   # full features
                pl.BlockSpec((Fp, Op), lambda i: (0, 0)),   # weight
                pl.BlockSpec((1, Op), lambda i: (0, 0)),    # bias
            ],
            out_specs=pl.BlockSpec((tm, Op), lambda i: (i, 0)),
        ),
        compiler_params=pltpu.CompilerParams(
            dimension_semantics=("parallel",),              # v7x: 2 TCs
            vmem_limit_bytes=48 * 1024 * 1024,               # > v5e 16 MiB default
        ),
        cost_estimate=cost,
    )(a_hat, feats, w, b)


def gcn_encoder_forward(x, edge_index, w1, b1, w2, b2, tm_target=256):
    """Model.forward: 2-layer GCN encoder.

    x: (N, F_in) f32 node features; edge_index: (2, E) int32 (src, dst);
    weights stored pre-transposed: w1 (F_in, H), w2 (H, F_out); biases 1-D.
    """
    N, F_in = x.shape
    H = w1.shape[1]
    F_out = w2.shape[1]

    # ---- dense symmetric-normalized adjacency (wrapper-side, per graph) ----
    src, dst = edge_index
    A = jnp.zeros((N, N), jnp.float32).at[dst, src].add(1.0)   # scatter-add
    A = A + jnp.eye(N, dtype=jnp.float32)                      # self loops
    d_inv_sqrt = jax.lax.rsqrt(jnp.sum(A, axis=1))
    a_hat = A * d_inv_sqrt[:, None] * d_inv_sqrt[None, :]

    # ---- tiling / padding ----
    SUB, LANE = 8, 128
    n8 = _round_up(N, SUB)
    if n8 <= tm_target:
        tm, Np = n8, n8                       # single row block (toy sizes)
    else:
        tm = tm_target
        Np = _round_up(N, tm)

    Fp = _round_up(F_in, LANE)                # lane-dense input features
    Hp = _round_up(H, LANE)                   # lane-dense hidden dim
    Cp = _round_up(F_out, LANE)               # lane-dense output dim

    a_hat_p = jnp.zeros((Np, Np), jnp.bfloat16).at[:N, :N].set(
        a_hat.astype(jnp.bfloat16))
    x_p = jnp.zeros((Np, Fp), jnp.bfloat16).at[:N, :F_in].set(
        x.astype(jnp.bfloat16))
    w1_p = jnp.zeros((Fp, Hp), jnp.bfloat16).at[:F_in, :H].set(
        w1.astype(jnp.bfloat16))
    b1_p = jnp.zeros((1, Hp), jnp.float32).at[0, :H].set(b1)
    w2_p = jnp.zeros((Hp, Cp), jnp.bfloat16).at[:H, :F_out].set(
        w2.astype(jnp.bfloat16))
    b2_p = jnp.zeros((1, Cp), jnp.float32).at[0, :F_out].set(b2)

    # layer 1 output kept bf16 so layer 2 reads half the bytes
    h = _gcn_layer(a_hat_p, x_p, w1_p, b1_p, tm, out_dtype=jnp.bfloat16)
    z = _gcn_layer(a_hat_p, h, w2_p, b2_p, tm, out_dtype=jnp.float32)
    return z[:N, :F_out]


def reference_forward_f32(x, edge_index, w1, b1, w2, b2):
    """Pure f32 reference (module semantics)."""
    N = x.shape[0]
    src, dst = edge_index
    A = jnp.zeros((N, N), jnp.float32).at[dst, src].add(1.0)
    A = A + jnp.eye(N, dtype=jnp.float32)
    d = jax.lax.rsqrt(jnp.sum(A, axis=1))
    a_hat = A * d[:, None] * d[None, :]
    h = jnp.maximum(a_hat @ (x @ w1) + b1.reshape(1, -1), 0.0)
    z = jnp.maximum(a_hat @ (h @ w2) + b2.reshape(1, -1), 0.0)
    return z


def reference_forward_bf16(x, edge_index, w1, b1, w2, b2):
    """Reference that mirrors the kernel's bf16-operand / f32-accumulate math."""
    N = x.shape[0]
    src, dst = edge_index
    A = jnp.zeros((N, N), jnp.float32).at[dst, src].add(1.0)
    A = A + jnp.eye(N, dtype=jnp.float32)
    d = jax.lax.rsqrt(jnp.sum(A, axis=1))
    a_hat = (A * d[:, None] * d[None, :]).astype(jnp.bfloat16)

    xw = jnp.dot(x.astype(jnp.bfloat16), w1.astype(jnp.bfloat16),
                 preferred_element_type=jnp.float32)
    h = jnp.maximum(
        jnp.dot(a_hat, xw.astype(jnp.bfloat16),
                preferred_element_type=jnp.float32) + b1.reshape(1, -1), 0.0)
    h = h.astype(jnp.bfloat16)
    hw = jnp.dot(h, w2.astype(jnp.bfloat16), preferred_element_type=jnp.float32)
    z = jnp.maximum(
        jnp.dot(a_hat, hw.astype(jnp.bfloat16),
                preferred_element_type=jnp.float32) + b2.reshape(1, -1), 0.0)
    return z


if __name__ == "__main__":
    # Small graph consistent with the module: N=16 nodes, in_channels=32,
    # out_channels=16 (hidden = 2*out = 32), k=2 GCN layers.
    N, F_in, F_out = 16, 32, 16
    H = 2 * F_out

    key = jax.random.PRNGKey(0)
    kx, ke1, ke2, kw1, kb1, kw2, kb2 = jax.random.split(key, 7)

    x = jax.random.normal(kx, (N, F_in), dtype=jnp.float32)

    # Random undirected edge list (both directions present), no self loops.
    E_half = 24
    src = jax.random.randint(ke1, (E_half,), 0, N)
    dst = (src + 1 + jax.random.randint(ke2, (E_half,), 0, N - 1)) % N
    edge_index = jnp.concatenate(
        [jnp.stack([src, dst]), jnp.stack([dst, src])], axis=1
    ).astype(jnp.int32)

    # GCNConv weights, stored pre-transposed as (in_features, out_features).
    bound1 = 1.0 / (F_in ** 0.5)
    bound2 = 1.0 / (H ** 0.5)
    w1 = jax.random.uniform(kw1, (F_in, H), jnp.float32, -bound1, bound1)
    b1 = jax.random.uniform(kb1, (H,), jnp.float32, -bound1, bound1)
    w2 = jax.random.uniform(kw2, (H, F_out), jnp.float32, -bound2, bound2)
    b2 = jax.random.uniform(kb2, (F_out,), jnp.float32, -bound2, bound2)

    z = gcn_encoder_forward(x, edge_index, w1, b1, w2, b2)
    z = jax.block_until_ready(z)
    assert z.shape == (N, F_out)

    # Tight check against the bf16-matched reference, loose check vs pure f32.
    z_bf16_ref = reference_forward_bf16(x, edge_index, w1, b1, w2, b2)
    z_f32_ref = reference_forward_f32(x, edge_index, w1, b1, w2, b2)
    assert jnp.allclose(z, z_bf16_ref, atol=1e-2, rtol=1e-2)
    assert jnp.allclose(z, z_f32_ref, atol=1e-1, rtol=1e-1)

    print("KERNEL_OK")
</pallas_src>

<mosaic_0001>
module attributes {stable_mosaic.version = 11 : i64} {
  func.func @gcn_layer_kernel(%arg0: i32, %arg1: memref<16x16xbf16, #tpu.memory_space<vmem>>, %arg2: memref<16x128xbf16, #tpu.memory_space<vmem>>, %arg3: memref<128x128xbf16, #tpu.memory_space<vmem>>, %arg4: memref<1x128xf32, #tpu.memory_space<vmem>>, %arg5: memref<16x128xbf16, #tpu.memory_space<vmem>>) attributes {dimension_semantics = [#tpu.dimension_semantics<parallel>], iteration_bounds = array<i64: 1>, scalar_prefetch = 0 : i64, scratch_operands = 0 : i64, tpu.core_type = #tpu.core_type<tc>, window_params = [{transform_indices = @transform_0, window_bounds = array<i64: 16, 16>}, {pipeline_mode = #tpu.pipeline_mode<synchronous>, transform_indices = @transform_1, window_bounds = array<i64: 16, 128>}, {pipeline_mode = #tpu.pipeline_mode<synchronous>, transform_indices = @transform_2, window_bounds = array<i64: 128, 128>}, {pipeline_mode = #tpu.pipeline_mode<synchronous>, transform_indices = @transform_3, window_bounds = array<i64: 1, 128>}, {transform_indices = @transform_4, window_bounds = array<i64: 16, 128>}]} {
    %c0 = arith.constant 0 : index
    %c0_0 = arith.constant 0 : index
    %0 = vector.load %arg2[%c0, %c0_0] : memref<16x128xbf16, #tpu.memory_space<vmem>>, vector<16x128xbf16>
    %c0_1 = arith.constant 0 : index
    %c0_2 = arith.constant 0 : index
    %1 = vector.load %arg3[%c0_1, %c0_2] : memref<128x128xbf16, #tpu.memory_space<vmem>>, vector<128x128xbf16>
    %cst = arith.constant dense<0.000000e+00> : vector<16x128xf32>
    %2 = tpu.matmul %0, %1, %cst {dimension_numbers = #tpu.dot_dimension_numbers<[1], [0], [0], [1], [0, 0, 1, 1], [], []>} : vector<16x128xbf16>, vector<128x128xbf16>, vector<16x128xf32> -> vector<16x128xf32>
    %c0_3 = arith.constant 0 : index
    %c0_4 = arith.constant 0 : index
    %3 = vector.load %arg1[%c0_3, %c0_4] : memref<16x16xbf16, #tpu.memory_space<vmem>>, vector<16x16xbf16>
    %4 = arith.truncf %2 : vector<16x128xf32> to vector<16x128xbf16>
    %cst_5 = arith.constant dense<0.000000e+00> : vector<16x128xf32>
    %5 = tpu.matmul %3, %4, %cst_5 {dimension_numbers = #tpu.dot_dimension_numbers<[1], [0], [0], [1], [0, 0, 1, 1], [], []>} : vector<16x16xbf16>, vector<16x128xbf16>, vector<16x128xf32> -> vector<16x128xf32>
    %c0_6 = arith.constant 0 : index
    %c0_7 = arith.constant 0 : index
    %6 = vector.load %arg4[%c0_6, %c0_7] : memref<1x128xf32, #tpu.memory_space<vmem>>, vector<1x128xf32>
    %7 = vector.broadcast %6 : vector<1x128xf32> to vector<16x128xf32>
    %8 = arith.addf %5, %7 : vector<16x128xf32>
    %cst_8 = arith.constant 0.000000e+00 : f32
    %9 = vector.broadcast %cst_8 : f32 to vector<16x128xf32>
    %10 = arith.maximumf %8, %9 : vector<16x128xf32>
    %11 = arith.truncf %10 : vector<16x128xf32> to vector<16x128xbf16>
    %c0_9 = arith.constant 0 : index
    %c0_10 = arith.constant 0 : index
    %12 = vector.load %arg5[%c0_9, %c0_10] : memref<16x128xbf16, #tpu.memory_space<vmem>>, vector<16x128xbf16>
    tpu.vector_store %arg5[%c0_9, %c0_10], %11 {strides = array<i32>} : memref<16x128xbf16, #tpu.memory_space<vmem>>, vector<16x128xbf16>,
    return
  }
  func.func @transform_0(%arg0: i32) -> (i32, i32) {
    %c0_i32 = arith.constant 0 : i32
    %c0_i32_0 = arith.constant 0 : i32
    return %arg0, %c0_i32 : i32, i32
  }
  func.func @transform_1(%arg0: i32) -> (i32, i32) {
    %c0_i32 = arith.constant 0 : i32
    %c0_i32_0 = arith.constant 0 : i32
    %c0_i32_1 = arith.constant 0 : i32
    return %c0_i32, %c0_i32_0 : i32, i32
  }
  func.func @transform_2(%arg0: i32) -> (i32, i32) {
    %c0_i32 = arith.constant 0 : i32
    %c0_i32_0 = arith.constant 0 : i32
    %c0_i32_1 = arith.constant 0 : i32
    return %c0_i32, %c0_i32_0 : i32, i32
  }
  func.func @transform_3(%arg0: i32) -> (i32, i32) {
    %c0_i32 = arith.constant 0 : i32
    %c0_i32_0 = arith.constant 0 : i32
    %c0_i32_1 = arith.constant 0 : i32
    return %c0_i32, %c0_i32_0 : i32, i32
  }
  func.func @transform_4(%arg0: i32) -> (i32, i32) {
    %c0_i32 = arith.constant 0 : i32
    %c0_i32_0 = arith.constant 0 : i32
    return %arg0, %c0_i32 : i32, i32
  }
}

</mosaic_0001>

<bundles_post_ra>
// kernel: tpu_custom_call.1
= control target key start
LH: loop header
LB: loop body
LE: loop exit
PB: predicated region body
PF: predicated region fallthrough
CT: control target
= control target key end

     0   :  { %9 = vsyncpa [#allocation3], 0  ;;  %s485_s0 = inlined_call_operand.hbm [shape: bf16[16,16], index: 0, kind: input, shape index: {}]   ;;  %s486_s1 = inlined_call_operand.hbm [shape: bf16[16,128], index: 1, kind: input, shape index: {}]   ;;  %s487_s2 = inlined_call_operand.hbm [shape: bf16[128,128], index: 2, kind: input, shape index: {}]   ;;  %s488_s3 = inlined_call_operand.vmem [shape: f32[1,128], index: 3, kind: input, shape index: {}]   ;;  %s489_s4 = inlined_call_operand.hbm [shape: bf16[16,128], index: 4, kind: output, shape index: {}]  }
   0x1   :  { %10 = vsyncpa [#allocation6], 0 }
   0x2   :  { %11 = vsyncpa [#allocation4], 0  ;;  %s425_s15 = smov [#allocation5]   ;;  %s426_s17 = smov [#allocation2]  }
   0x3   :  { %s29_s16 = sshll.u32 %s425_s15, 4  ;;  %s17_s18 = sshll.u32 %s426_s17, 4  ;;  %s30_s16 = int_to_ptr.vmem [resolvable:$true] %s29_s16  ;;  %s18_s18 = int_to_ptr.vmem [resolvable:$true] %s17_s18 }
   0x4   :  { %s347_s19 = scalar_lea.vmem %s30_s16, 128  ;;  %p352_p1 = scmp.lt.s32.totalorder %s30_s16, %s30_s16 }
   0x5   :  { %p348_p0 = scmp.ne.s32.totalorder %s30_s16, %s347_s19  ;;  %p353_p2 = scmp.lt.s32.totalorder %s347_s19, %s347_s19 }
   0x7   :  { %p354_p3 = por %p353_p2, %p352_p1 }
   0x9   :  { %p355_p4 = pnand %p354_p3, %p348_p0 }
   0xb   :  { %358 = shalt.err (!%p355_p4)
}
   0xc   :  { %s427_s20 = smov 64   ;;  %s428_s21 = smov 4  }
   0xd   :  { %35 = dma.hbm_to_vmem [thread:$0]  %s486_s1, 128, %s30_s16, [#allocation6], %s427_s20, %s427_s20, %s428_s21  }
   0xe   :  { %s367_s24 = scalar_lea.vmem %s18_s18, 128  ;;  %p372_p6 = scmp.lt.s32.totalorder %s18_s18, %s18_s18 }
   0xf   :  { %p368_p5 = scmp.ne.s32.totalorder %s18_s18, %s367_s24  ;;  %p373_p7 = scmp.lt.s32.totalorder %s367_s24, %s367_s24 }
  0x11   :  { %p374_p8 = por %p373_p7, %p372_p6 }
  0x13   :  { %p375_p9 = pnand %p374_p8, %p368_p5 }
  0x15   :  { %378 = shalt.err (!%p375_p9)
}
  0x16   :  { %23 = dma.hbm_to_vmem [thread:$0]  %s485_s0, 128, %s18_s18, [#allocation3], %s427_s20, %s427_s20, %s428_s21  }
  0x17   :  { %s429_s27 = smov [#allocation7]  }
  0x18   :  { %s41_s28 = sshll.u32 %s429_s27, 4  ;;  %s42_s28 = int_to_ptr.vmem [resolvable:$true] %s41_s28 }
  0x19   :  { %s387_s29 = scalar_lea.vmem %s42_s28, 1024  ;;  %p392_p11 = scmp.lt.s32.totalorder %s42_s28, %s42_s28 }
  0x1a   :  { %p388_p10 = scmp.ne.s32.totalorder %s42_s28, %s387_s29  ;;  %p393_p12 = scmp.lt.s32.totalorder %s387_s29, %s387_s29 }
  0x1c   :  { %p394_p13 = por %p393_p12, %p392_p11 }
  0x1e   :  { %p395_p0 = pnand %p394_p13, %p388_p10 }
  0x20   :  { %398 = shalt.err (!%p395_p0)
}
  0x21   :  { %47 = dma.hbm_to_vmem [thread:$0]  %s487_s2, 1024, %s42_s28, [#allocation6], %s427_s20, %s427_s20, %s428_s21  }
  0x22   :  { %419 = dma.done.wait [#allocation3], 128  }
  0x23   :  { %420 = vsyncadd [#allocation3], 4294967168 }
  0x24   :  { %421 = dma.done.wait [#allocation6], 1152  }
  0x25   :  { %422 = vsyncadd [#allocation6], 4294966144  ;;  %v430_v0 = vmov 0.0   ;;  %vm431_vm0 = vmmov 0   ;;  %v329_v1 = vld [vmem:[#allocation7 + $0x38] sm:$0xff]   ;;  %v330_v2 = vld [vmem:[#allocation7 + $0x30] sm:$0xff]  }
  0x26   :  { %295 = vmatprep.subr.bf16.mxu0 %v430_v0  ;;  %311 = vmatprep.mubr.msk.bf16.mxu0 %vm431_vm0, %v430_v0  ;;  %v331_v3 = vld [vmem:[#allocation7 + $0x28] sm:$0xff]   ;;  %v332_v4 = vld [vmem:[#allocation7 + $0x20] sm:$0xff]   ;;  %v333_v5 = vld [vmem:[#allocation7 + $0x18] sm:$0xff]   ;;  %vm188_vm1 = vcmask 130048   ;;  %s432_s5 = smov [#allocation8]  }
  0x27   :  { %315 = vmatprep.subr.bf16.mxu1 %v430_v0  ;;  %317 = vmatprep.mubr.msk.bf16.mxu1 %vm431_vm0, %v430_v0  ;;  %v334_v6 = vld [vmem:[#allocation7 + $0x10] sm:$0xff]   ;;  %v335_v7 = vld [vmem:[#allocation7 + $0x8] sm:$0xff]   ;;  %v336_v8 = vld [vmem:[#allocation7] sm:$0xff]   ;;  %s250_s6 = sshll.u32 %s432_s5, 4  ;;  %s251_s6 = int_to_ptr.vmem [resolvable:$true] %s250_s6 }
  0x28   :  { %296 = vmatpush3.bf16.msra.mxu0 %v329_v1  ;;  %v337_v9 = vld [vmem:[#allocation5] sm:$0xff]   ;;  %v338_v15 = vld [vmem:[#allocation2] sm:$0xff]   ;;  %s399_s7 = scalar_lea.vmem %s251_s6, 128  ;;  %p404_p2 = scmp.lt.s32.totalorder %s251_s6, %s251_s6 }
  0x29   :  { %297 = vmatprep.subr.bf16.mxu0 %v430_v0  ;;  %v272_v16 = vld [vmem:[%s488_s3] ss:$0 sm:$0xff]  ;;  %p400_p1 = scmp.ne.s32.totalorder %s251_s6, %s399_s7  ;;  %p405_p3 = scmp.lt.s32.totalorder %s399_s7, %s399_s7 }
  0x2b   :  { %p406_p4 = por %p405_p3, %p404_p2 }
  0x2c   :  { %298 = vmatpush3.bf16.msra.mxu0 %v330_v2 }
  0x2d   :  { %299 = vmatprep.subr.bf16.mxu0 %v430_v0  ;;  %p407_p5 = pnand %p406_p4, %p400_p1 }
  0x30   :  { %300 = vmatpush3.bf16.msra.mxu0 %v331_v3 }
  0x31   :  { %301 = vmatprep.subr.bf16.mxu0 %v430_v0 }
  0x34   :  { %302 = vmatpush3.bf16.msra.mxu0 %v332_v4 }
  0x35   :  { %303 = vmatprep.subr.bf16.mxu0 %v430_v0 }
  0x38   :  { %304 = vmatpush3.bf16.msra.mxu0 %v333_v5 }
  0x39   :  { %305 = vmatprep.subr.bf16.mxu0 %v430_v0 }
  0x3c   :  { %306 = vmatpush3.bf16.msra.mxu0 %v334_v6 }
  0x3d   :  { %307 = vmatprep.subr.bf16.mxu0 %v430_v0 }
  0x40   :  { %308 = vmatpush3.bf16.msra.mxu0 %v335_v7 }
  0x41   :  { %309 = vmatprep.subr.bf16.mxu0 %v430_v0 }
  0x44   :  { %310 = vmatpush3.bf16.msra.mxu0 %v336_v8 }
  0x47   :  { %312 = vmatmul.mubr.bf16.vlgmr.msra.gmra.mxu0 %v337_v9 }
 0x107   :  { %v166_v10 = vpop.f32.mrf.mxu0 }
 0x109   :  { %v313_v11 = vpop.f32.mrf.mxu0 }
 0x10b   :  { %v169_v12 = vpop.f32.mrf.mxu0 }
 0x10c   :  { %v175_v13 = vpack.c.bf16 %v169_v12, %v166_v10 }
 0x10d   :  { %v314_v14 = vpop.f32.mrf.mxu0 }
 0x10e   :  { %316 = vmatpush3.bf16.msra.mxu1 %v175_v13 }
 0x111   :  { %318 = vmatmul.mubr.msk.bf16.vlgmr.msra.gmra.mxu1 %vm188_vm1, %v338_v15 }
 0x1d1   :  { %v226_v17 = vpop.f32.mrf.mxu1 }
 0x1d2   :  { %v227_v19 = vadd.f32 %v272_v16, %v226_v17 }
 0x1d3   :  { %v319_v18 = vpop.f32.mrf.mxu1 }
 0x1d4   :  { %v233_v23 = vmax.f32 %v227_v19, 0.0 }
 0x1d5   :  { %v229_v20 = vpop.f32.mrf.mxu1 }
 0x1d6   :  { %v230_v21 = vadd.f32 %v272_v16, %v229_v20 }
 0x1d7   :  { %v320_v22 = vpop.f32.mrf.mxu1 }
 0x1d8   :  { %v234_v24 = vmax.f32 %v230_v21, 0.0 }
 0x1da   :  { %v282_v25 = vpack.c.bf16 %v234_v24, %v233_v23 }
 0x1dc   :  { %283 = vst [vmem:[#allocation8] sm:$0xff] %v282_v25  }
 0x1dd   :  { %410 = shalt.err (!%p407_p5)
}
 0x1de   :  { %256 = dma.vmem_to_hbm [thread:$0]  %s251_s6, 128, %s489_s4, [#allocation4], %s427_s20, %s427_s20, %s428_s21  }
 0x1df   :  { %423 = dma.done.wait [#allocation4], 128  }
 0x1e0   :  { %424 = vsyncadd [#allocation4], 4294967168 }
 0x1e1   :  { %260 = vsyncpa [#allocation3], 1 }
 0x1e2   :  { %261 = vsyncpa [#allocation6], 1 }
 0x1e3   :  { %262 = vsyncpa [#allocation4], 1 }

</bundles_post_ra>
